<compile_context>
chip_gen: v6e
topology: v6e:2x2x1
jax: 0.10.0
libtpu: 0.0.40
codegen_flags: <defaults>
</compile_context>

<pallas_src>
import functools
import math

import numpy as np
import jax
import jax.numpy as jnp
from jax.experimental import pallas as pl
from jax.experimental.pallas import tpu as pltpu


def _round_up(v, m):
    return ((v + m - 1) // m) * m


def _build_avg_matrices(kernel_sizes, seq_len):
    """A[kk] is the (L, L) replicate-padded moving-average operator for kernel_sizes[kk]."""
    K = len(kernel_sizes)
    L = seq_len
    A = np.zeros((K, L, L), dtype=np.float32)
    for kk, k in enumerate(kernel_sizes):
        front = k - 1 - (k - 1) // 2
        inv_k = 1.0 / k
        for t in range(L):
            for j in range(k):
                src = min(max(t + j - front, 0), L - 1)
                A[kk, t, src] += inv_k
    return jnp.asarray(A)


def _choose_tile(total_lanes, seq_len, num_kernels):
    """Lane tile: multiple of 128, ~2 MiB per (L, tile) block, bounded VMEM working set."""
    lane_pad = _round_up(total_lanes, 128)
    target = (2 * 1024 * 1024) // (4 * seq_len)                      # ~2 MiB block
    # per-step live set ~ (2 in bufs + 4 out bufs + K logits + ~7 temporaries) blocks
    budget = (24 * 1024 * 1024) // (4 * seq_len * (num_kernels + 13))
    tile = max(128, min(target, budget, 4096, lane_pad))
    tile = (tile // 128) * 128
    while lane_pad % tile != 0:
        tile -= 128
    # Prefer >= 2 grid steps along the lane axis (v7x megacore has 2 TensorCores).
    if lane_pad // tile < 2 and tile > 128:
        tile = max(128, (tile // 2 // 128) * 128)
        while lane_pad % tile != 0:
            tile -= 128
    return tile, lane_pad


def _decomp_kernel(K, w_ref, b_ref, a_ref, x_ref, res_ref, mean_ref):
    """One (L, TILE) lane tile per grid step.

    w_ref, b_ref : SMEM (K,) f32  -- Linear(1, K) weight[:, 0] and bias
    a_ref        : VMEM (K, L, L) f32 -- per-kernel-size averaging operators
    x_ref        : VMEM (L, TILE) input tile
    res_ref      : VMEM (L, TILE) output (x - moving_mean)
    mean_ref     : VMEM (L, TILE) output (moving_mean)
    """
    x = x_ref[...].astype(jnp.float32)

    # Linear(1, K) logits, computed once and reused by the max pass and the exp pass.
    logits = [w_ref[kk] * x + b_ref[kk] for kk in range(K)]

    m = logits[0]
    for kk in range(1, K):
        m = jnp.maximum(m, logits[kk])

    num = jnp.zeros_like(x)
    den = jnp.zeros_like(x)
    for kk in range(K):
        # Moving average on the (otherwise idle) MXU: (L, L) @ (L, TILE).
        # HIGHEST precision keeps the f32 result exact (~1e-6 rel error).
        mavg = jnp.dot(a_ref[kk], x,
                       precision=jax.lax.Precision.HIGHEST,
                       preferred_element_type=jnp.float32)
        e = jnp.exp(logits[kk] - m)
        den = den + e
        num = num + mavg * e

    # Exact divide: the kernel is memory-bound, so the exact reciprocal is free and
    # avoids the coarse approximate-EUP reciprocal that broke the previous version.
    mean = num / den
    mean_ref[...] = mean.astype(mean_ref.dtype)
    res_ref[...] = (x - mean).astype(res_ref.dtype)


def series_decomp_multi(x, weight, bias, kernel_sizes):
    """x: (B, L, C); weight: (K, 1); bias: (K,). Returns (res, moving_mean), both (B, L, C)."""
    B, L, C = x.shape
    K = len(kernel_sizes)
    assert K >= 1 and all(k >= 1 for k in kernel_sizes)
    assert weight.shape == (K, 1) and bias.shape == (K,)

    w = weight.reshape(K).astype(jnp.float32)
    b = bias.reshape(K).astype(jnp.float32)
    A = _build_avg_matrices(kernel_sizes, L)  # (K, L, L) f32

    kernel = functools.partial(_decomp_kernel, K)
    smem_spec = pl.BlockSpec(memory_space=pltpu.MemorySpace.SMEM)
    cparams = lambda dims: pltpu.CompilerParams(
        dimension_semantics=dims,
        vmem_limit_bytes=48 * 1024 * 1024,  # safe on v5e/v6e (128 MiB) and v7x (64 MiB)
    )

    if C >= 128:
        # Direct lane-dense path: x stays (B, L, C); no wrapper transposes.
        TC, C_pad = _choose_tile(C, L, K)
        xin = x if C_pad == C else jnp.pad(x, ((0, 0), (0, 0), (0, C_pad - C)))
        grid = (B, C_pad // TC)
        tile_spec = pl.BlockSpec((None, L, TC), lambda bi, ci: (bi, 0, ci))
        a_spec = pl.BlockSpec((K, L, L), lambda bi, ci: (0, 0, 0))
        res, mean = pl.pallas_call(
            kernel,
            grid=grid,
            in_specs=[smem_spec, smem_spec, a_spec, tile_spec],
            out_specs=(tile_spec, tile_spec),
            out_shape=(
                jax.ShapeDtypeStruct((B, L, C_pad), x.dtype),
                jax.ShapeDtypeStruct((B, L, C_pad), x.dtype),
            ),
            compiler_params=cparams(("parallel", "parallel")),
        )(w, b, A, xin)
        if C_pad != C:
            res, mean = res[..., :C], mean[..., :C]
        return res, mean

    # Fallback for narrow channels: fold (B, L, C) -> (L, B*C) so lanes are dense.
    N = B * C
    TN, N_pad = _choose_tile(N, L, K)
    x2 = jnp.transpose(x, (1, 0, 2)).reshape(L, N)
    if N_pad != N:
        x2 = jnp.pad(x2, ((0, 0), (0, N_pad - N)))
    grid = (N_pad // TN,)
    tile_spec = pl.BlockSpec((L, TN), lambda i: (0, i))
    a_spec = pl.BlockSpec((K, L, L), lambda i: (0, 0, 0))
    res2, mean2 = pl.pallas_call(
        kernel,
        grid=grid,
        in_specs=[smem_spec, smem_spec, a_spec, tile_spec],
        out_specs=(tile_spec, tile_spec),
        out_shape=(
            jax.ShapeDtypeStruct((L, N_pad), x.dtype),
            jax.ShapeDtypeStruct((L, N_pad), x.dtype),
        ),
        compiler_params=cparams(("parallel",)),
    )(w, b, A, x2)

    def unfold(y):
        return jnp.transpose(y[:, :N].reshape(L, B, C), (1, 0, 2))

    return unfold(res2), unfold(mean2)


def _reference(x, weight, bias, kernel_sizes):
    """Pure-JAX reference mirroring the PyTorch forward."""
    B, L, C = x.shape
    K = len(kernel_sizes)

    def pad_edges(x, k):
        front_n = k - 1 - (k - 1) // 2
        end_n = (k - 1) // 2
        front = jnp.repeat(x[:, :1, :], front_n, axis=1)
        end = jnp.repeat(x[:, -1:, :], end_n, axis=1)
        return jnp.concatenate([front, x, end], axis=1)

    mavgs = []
    for k in kernel_sizes:
        xp = pad_edges(x, k)  # (B, L+k-1, C)
        windows = jnp.stack([xp[:, j:j + L, :] for j in range(k)], axis=0)
        mavgs.append(jnp.mean(windows, axis=0))
    moving_mean = jnp.stack(mavgs, axis=-1)  # (B, L, C, K)
    logits = x[..., None] * weight.reshape(1, 1, 1, K) + bias.reshape(1, 1, 1, K)
    wts = jax.nn.softmax(logits, axis=-1)
    mm = jnp.sum(moving_mean * wts, axis=-1)
    return x - mm, mm


if __name__ == "__main__":
    key = jax.random.PRNGKey(0)

    def init_linear(k, K):
        kw, kb = jax.random.split(k)
        bound = 1.0 / math.sqrt(1.0)  # PyTorch Linear(1, K) default init bound
        weight = jax.random.uniform(kw, (K, 1), minval=-bound, maxval=bound, dtype=jnp.float32)
        bias = jax.random.uniform(kb, (K,), minval=-bound, maxval=bound, dtype=jnp.float32)
        return weight, bias

    # Case 1: narrow channels -> folded (L, B*C) lane layout.  Includes an even kernel
    # size to exercise the asymmetric replicate padding.
    kernel_sizes = [3, 4]
    B, L, C = 2, 16, 8
    k1, k2, key = jax.random.split(key, 3)
    x = jax.random.normal(k1, (B, L, C), dtype=jnp.float32)
    weight, bias = init_linear(k2, len(kernel_sizes))
    res, mm = series_decomp_multi(x, weight, bias, kernel_sizes)
    jax.block_until_ready((res, mm))
    res_ref, mm_ref = _reference(x, weight, bias, kernel_sizes)
    assert jnp.allclose(res, res_ref, atol=1e-3, rtol=1e-3), "res mismatch (fold path)"
    assert jnp.allclose(mm, mm_ref, atol=1e-3, rtol=1e-3), "moving_mean mismatch (fold path)"

    # Case 2: lane-dense channels (C >= 128) -> direct (B, L, C) layout, no transposes.
    kernel_sizes2 = [3, 5, 7]
    B2, L2, C2 = 2, 16, 128
    k3, k4, _ = jax.random.split(key, 3)
    x2 = jax.random.normal(k3, (B2, L2, C2), dtype=jnp.float32)
    w2, b2 = init_linear(k4, len(kernel_sizes2))
    res2, mm2 = series_decomp_multi(x2, w2, b2, kernel_sizes2)
    jax.block_until_ready((res2, mm2))
    res2_ref, mm2_ref = _reference(x2, w2, b2, kernel_sizes2)
    assert jnp.allclose(res2, res2_ref, atol=1e-3, rtol=1e-3), "res mismatch (direct path)"
    assert jnp.allclose(mm2, mm2_ref, atol=1e-3, rtol=1e-3), "moving_mean mismatch (direct path)"

    print("KERNEL_OK")
</pallas_src>

<mosaic_0001>
module attributes {stable_mosaic.version = 11 : i64} {
  func.func @_decomp_kernel(%arg0: i32, %arg1: memref<2xf32, #tpu.memory_space<smem>>, %arg2: memref<2xf32, #tpu.memory_space<smem>>, %arg3: memref<2x16x16xf32, #tpu.memory_space<vmem>>, %arg4: memref<16x128xf32, #tpu.memory_space<vmem>>, %arg5: memref<16x128xf32, #tpu.memory_space<vmem>>, %arg6: memref<16x128xf32, #tpu.memory_space<vmem>>) attributes {dimension_semantics = [#tpu.dimension_semantics<parallel>], iteration_bounds = array<i64: 1>, scalar_prefetch = 0 : i64, scratch_operands = 0 : i64, tpu.core_type = #tpu.core_type<tc>, window_params = [{transform_indices = @transform_0, window_bounds = array<i64: 2>}, {transform_indices = @transform_1, window_bounds = array<i64: 2>}, {pipeline_mode = #tpu.pipeline_mode<synchronous>, transform_indices = @transform_2, window_bounds = array<i64: 2, 16, 16>}, {transform_indices = @transform_3, window_bounds = array<i64: 16, 128>}, {transform_indices = @transform_4, window_bounds = array<i64: 16, 128>}, {transform_indices = @transform_5, window_bounds = array<i64: 16, 128>}]} {
    %c0 = arith.constant 0 : index
    %c0_0 = arith.constant 0 : index
    %0 = vector.load %arg4[%c0, %c0_0] : memref<16x128xf32, #tpu.memory_space<vmem>>, vector<16x128xf32>
    %c0_1 = arith.constant 0 : index
    %1 = memref.load %arg1[%c0_1] : memref<2xf32, #tpu.memory_space<smem>>
    %2 = vector.broadcast %1 : f32 to vector<16x128xf32>
    %3 = arith.mulf %2, %0 : vector<16x128xf32>
    %c0_2 = arith.constant 0 : index
    %4 = memref.load %arg2[%c0_2] : memref<2xf32, #tpu.memory_space<smem>>
    %5 = vector.broadcast %4 : f32 to vector<16x128xf32>
    %6 = arith.addf %3, %5 : vector<16x128xf32>
    %c1 = arith.constant 1 : index
    %7 = memref.load %arg1[%c1] : memref<2xf32, #tpu.memory_space<smem>>
    %8 = vector.broadcast %7 : f32 to vector<16x128xf32>
    %9 = arith.mulf %8, %0 : vector<16x128xf32>
    %c1_3 = arith.constant 1 : index
    %10 = memref.load %arg2[%c1_3] : memref<2xf32, #tpu.memory_space<smem>>
    %11 = vector.broadcast %10 : f32 to vector<16x128xf32>
    %12 = arith.addf %9, %11 : vector<16x128xf32>
    %13 = arith.maximumf %6, %12 : vector<16x128xf32>
    %cst = arith.constant 0.000000e+00 : f32
    %14 = vector.broadcast %cst : f32 to vector<16x128xf32>
    %cst_4 = arith.constant 0.000000e+00 : f32
    %15 = vector.broadcast %cst_4 : f32 to vector<16x128xf32>
    %c0_5 = arith.constant 0 : index
    %c0_6 = arith.constant 0 : index
    %c0_7 = arith.constant 0 : index
    %16 = vector.load %arg3[%c0_5, %c0_6, %c0_7] : memref<2x16x16xf32, #tpu.memory_space<vmem>>, vector<1x16x16xf32>
    %17 = vector.shape_cast %16 : vector<1x16x16xf32> to vector<16x16xf32>
    %cst_8 = arith.constant dense<0.000000e+00> : vector<16x128xf32>
    %18 = tpu.matmul %17, %0, %cst_8 {dimension_numbers = #tpu.dot_dimension_numbers<[1], [0], [0], [1], [0, 0, 1, 1], [], []>, precision = #tpu.contract_precision<fp32>} : vector<16x16xf32>, vector<16x128xf32>, vector<16x128xf32> -> vector<16x128xf32>
    %19 = arith.subf %6, %13 : vector<16x128xf32>
    %20 = math.exp %19 : vector<16x128xf32>
    %21 = arith.addf %15, %20 : vector<16x128xf32>
    %22 = arith.mulf %18, %20 : vector<16x128xf32>
    %23 = arith.addf %14, %22 : vector<16x128xf32>
    %c1_9 = arith.constant 1 : index
    %c0_10 = arith.constant 0 : index
    %c0_11 = arith.constant 0 : index
    %24 = vector.load %arg3[%c1_9, %c0_10, %c0_11] : memref<2x16x16xf32, #tpu.memory_space<vmem>>, vector<1x16x16xf32>
    %25 = vector.shape_cast %24 : vector<1x16x16xf32> to vector<16x16xf32>
    %cst_12 = arith.constant dense<0.000000e+00> : vector<16x128xf32>
    %26 = tpu.matmul %25, %0, %cst_12 {dimension_numbers = #tpu.dot_dimension_numbers<[1], [0], [0], [1], [0, 0, 1, 1], [], []>, precision = #tpu.contract_precision<fp32>} : vector<16x16xf32>, vector<16x128xf32>, vector<16x128xf32> -> vector<16x128xf32>
    %27 = arith.subf %12, %13 : vector<16x128xf32>
    %28 = math.exp %27 : vector<16x128xf32>
    %29 = arith.addf %21, %28 : vector<16x128xf32>
    %30 = arith.mulf %26, %28 : vector<16x128xf32>
    %31 = arith.addf %23, %30 : vector<16x128xf32>
    %32 = arith.divf %31, %29 : vector<16x128xf32>
    %c0_13 = arith.constant 0 : index
    %c0_14 = arith.constant 0 : index
    %33 = vector.load %arg6[%c0_13, %c0_14] : memref<16x128xf32, #tpu.memory_space<vmem>>, vector<16x128xf32>
    tpu.vector_store %arg6[%c0_13, %c0_14], %32 {strides = array<i32>} : memref<16x128xf32, #tpu.memory_space<vmem>>, vector<16x128xf32>,
    %34 = arith.subf %0, %32 : vector<16x128xf32>
    %c0_15 = arith.constant 0 : index
    %c0_16 = arith.constant 0 : index
    %35 = vector.load %arg5[%c0_15, %c0_16] : memref<16x128xf32, #tpu.memory_space<vmem>>, vector<16x128xf32>
    tpu.vector_store %arg5[%c0_15, %c0_16], %34 {strides = array<i32>} : memref<16x128xf32, #tpu.memory_space<vmem>>, vector<16x128xf32>,
    return
  }
  func.func @transform_0(%arg0: i32) -> i32 {
    %c0_i32 = arith.constant 0 : i32
    %c0_i32_0 = arith.constant 0 : i32
    return %c0_i32 : i32
  }
  func.func @transform_1(%arg0: i32) -> i32 {
    %c0_i32 = arith.constant 0 : i32
    %c0_i32_0 = arith.constant 0 : i32
    return %c0_i32 : i32
  }
  func.func @transform_2(%arg0: i32) -> (i32, i32, i32) {
    %c0_i32 = arith.constant 0 : i32
    %c0_i32_0 = arith.constant 0 : i32
    %c0_i32_1 = arith.constant 0 : i32
    %c0_i32_2 = arith.constant 0 : i32
    return %c0_i32, %c0_i32_0, %c0_i32_1 : i32, i32, i32
  }
  func.func @transform_3(%arg0: i32) -> (i32, i32) {
    %c0_i32 = arith.constant 0 : i32
    %c0_i32_0 = arith.constant 0 : i32
    return %c0_i32, %arg0 : i32, i32
  }
  func.func @transform_4(%arg0: i32) -> (i32, i32) {
    %c0_i32 = arith.constant 0 : i32
    %c0_i32_0 = arith.constant 0 : i32
    return %c0_i32, %arg0 : i32, i32
  }
  func.func @transform_5(%arg0: i32) -> (i32, i32) {
    %c0_i32 = arith.constant 0 : i32
    %c0_i32_0 = arith.constant 0 : i32
    return %c0_i32, %arg0 : i32, i32
  }
}

</mosaic_0001>

<bundles_post_ra>
// kernel: tpu_custom_call.1
= control target key start
LH: loop header
LB: loop body
LE: loop exit
PB: predicated region body
PF: predicated region fallthrough
CT: control target
= control target key end

     0   :  { %11 = vsyncpa [#allocation5], 0  ;;  %s1620_s0 = inlined_call_operand.hbm [shape: f32[2], index: 0, kind: input, shape index: {}]   ;;  %s1621_s1 = inlined_call_operand.vmem [shape: f32[2], index: 1, kind: input, shape index: {}]   ;;  %s1622_s2 = inlined_call_operand.hbm [shape: f32[2,16,16], index: 2, kind: input, shape index: {}]   ;;  %s1623_s3 = inlined_call_operand.hbm [shape: f32[16,128], index: 3, kind: input, shape index: {}]   ;;  %s1624_s4 = inlined_call_operand.hbm [shape: f32[16,128], index: 4, kind: output, shape index: {0}]   ;;  %s1625_s5 = inlined_call_operand.hbm [shape: f32[16,128], index: 5, kind: output, shape index: {1}]  }
   0x1   :  { %12 = vsyncpa [#allocation6], 0 }
   0x2   :  { %13 = vsyncpa [#allocation3], 0 }
   0x3   :  { %14 = vsyncpa [#allocation10], 0 }
   0x4   :  { %15 = vsyncpa [#allocation4], 0 }
   0x5   :  { %16 = vsyncpa [#allocation13], 0  ;;  %s31_s20 = sshll.u32 %s1621_s1, 4  ;;  %s1450_s21 = smov [#allocation2]   ;;  %s32_s20 = int_to_ptr.vmem [resolvable:$true] %s31_s20 }
   0x6   :  { %24 = dma.hbm_to_smem %s1620_s0, 16, %s1450_s21, [#allocation5]  }
   0x7   :  { %s1346_s24 = scalar_lea.vmem %s32_s20, 16  ;;  %p1351_p1 = scmp.lt.s32.totalorder %s32_s20, %s32_s20 }
   0x8   :  { %p1347_p0 = scmp.ne.s32.totalorder %s32_s20, %s1346_s24  ;;  %p1352_p2 = scmp.lt.s32.totalorder %s1346_s24, %s1346_s24 }
   0xa   :  { %p1353_p3 = por %p1352_p2, %p1351_p1 }
   0xc   :  { %p1354_p4 = pnand %p1353_p3, %p1347_p0 }
   0xe   :  { %1357 = shalt.err (!%p1354_p4)
}
   0xf   :  { %s1451_s25 = smov [#allocation7]   ;;  %s1452_s26 = smov [#allocation8]  }
  0x10   :  { %34 = dma.vmem_to_smem %s32_s20, 16, %s1451_s25, [#allocation6]  }
  0x11   :  { %s40_s27 = sshll.u32 %s1452_s26, 4  ;;  %s41_s27 = int_to_ptr.vmem [resolvable:$true] %s40_s27 }
  0x12   :  { %s1366_s28 = scalar_lea.vmem %s41_s27, 512  ;;  %p1371_p6 = scmp.lt.s32.totalorder %s41_s27, %s41_s27 }
  0x13   :  { %p1367_p5 = scmp.ne.s32.totalorder %s41_s27, %s1366_s28  ;;  %p1372_p7 = scmp.lt.s32.totalorder %s1366_s28, %s1366_s28 }
  0x15   :  { %p1373_p8 = por %p1372_p7, %p1371_p6 }
  0x17   :  { %p1374_p9 = pnand %p1373_p8, %p1367_p5 }
  0x19   :  { %1377 = shalt.err (!%p1374_p9)
}
  0x1a   :  { %s1453_s0 = smov 128   ;;  %s1454_s1 = smov 8  }
  0x1b   :  { %46 = dma.hbm_to_vmem [thread:$0]  %s1622_s2, 512, %s41_s27, [#allocation3], %s1453_s0, %s1453_s0, %s1454_s1  }
  0x1c   :  { %s1455_s6 = smov [#allocation9]  }
  0x1d   :  { %s52_s7 = sshll.u32 %s1455_s6, 4  ;;  %s53_s7 = int_to_ptr.vmem [resolvable:$true] %s52_s7 }
  0x1e   :  { %s1386_s8 = scalar_lea.vmem %s53_s7, 256  ;;  %p1391_p11 = scmp.lt.s32.totalorder %s53_s7, %s53_s7 }
  0x1f   :  { %p1387_p10 = scmp.ne.s32.totalorder %s53_s7, %s1386_s8  ;;  %p1392_p12 = scmp.lt.s32.totalorder %s1386_s8, %s1386_s8 }
  0x21   :  { %p1393_p13 = por %p1392_p12, %p1391_p11 }
  0x23   :  { %p1394_p0 = pnand %p1393_p13, %p1387_p10 }
  0x25   :  { %1397 = shalt.err (!%p1394_p0)
}
  0x26   :  { %58 = dma.hbm_to_vmem [thread:$0]  %s1623_s3, 256, %s53_s7, [#allocation10], %s1453_s0, %s1453_s0, %s1454_s1  }
  0x27   :  { %1438 = dma.done.wait [#allocation5], 16  }
  0x28   :  { %1439 = vsyncadd [#allocation5], 4294967280 }
  0x29   :  { %1440 = dma.done.wait [#allocation6], 16  }
  0x2a   :  { %1441 = vsyncadd [#allocation6], 4294967280 }
  0x2b   :  { %1442 = dma.done.wait [#allocation3], 512  }
  0x2c   :  { %1443 = vsyncadd [#allocation3], 4294966784 }
  0x2d   :  { %1444 = dma.done.wait [#allocation10], 256  }
  0x2e   :  { %1445 = vsyncadd [#allocation10], 4294967040 }
  0x2f   :  { %71 = sfence }
  0x30   :  { %v1506_v0 = vld [vmem:[#allocation9 + $0x8] sm:$0xff]  ;;  %v1508_v1 = vld [vmem:[#allocation9] sm:$0xff]  ;;  %vm94_vm0 = vcmask 130048   ;;  %v616_v12 = vld [vmem:[#allocation8 + $0x10] sm:$0xff]  ;;  %s74_s2 = sld [smem:[#allocation2]]  ;;  %s1456_s13 = smov [#allocation12]  }
  0x31   :  { %v92_v2 = vld [vmem:[#allocation8] sm:$0xff]  ;;  %v1511_v3 = vand.u32 4294901760, %v1506_v0  ;;  %v1514_v4 = vand.u32 4294901760, %v1508_v1  ;;  %v93_v6 = vld [vmem:[#allocation8 + $0x8] sm:$0xff]  ;;  %v617_v14 = vld [vmem:[#allocation8 + $0x18] sm:$0xff]  ;;  %v619_v19 = vsel %vm94_vm0, %v616_v12, 0 }
  0x32   :  { %v96_v5 = vsel %vm94_vm0, %v92_v2, 0  ;;  %v99_v8 = vsel %vm94_vm0, %v93_v6, 0  ;;  %v622_v23 = vsel %vm94_vm0, %v617_v14, 0  ;;  %v1550_v28 = vand.u32 4294901760, %v619_v19  ;;  %s1184_s3 = sld [smem:[#allocation2 + $0x1]]  ;;  %s1165_s14 = sshll.u32 %s1456_s13, 4  ;;  %s1166_s14 = int_to_ptr.vmem [resolvable:$true] %s1165_s14 }
  0x33   :  { %v1517_v7 = vand.u32 4294901760, %v96_v5  ;;  %1234 = vmatprep.subr.mxu0 %v1511_v3  ;;  %v1523_v9 = vsub.f32 %v1506_v0, %v1511_v3  ;;  %v1525_v10 = vand.u32 4294901760, %v99_v8  ;;  %v1529_v11 = vsub.f32 %v1508_v1, %v1514_v4  ;;  %s78_s11 = sld [smem:[#allocation7]]  ;;  %s1457_s15 = smov [#allocation11]  }
  0x34   :  { %1235 = vmatpush3.msra.mxu0 %v1511_v3  ;;  %v1552_v30 = vand.u32 4294901760, %v622_v23  ;;  %v692_v32 = vsub.f32 %v619_v19, %v1550_v28  ;;  %s1185_s12 = sld [smem:[#allocation7 + $0x1]]  ;;  %s1153_s16 = sshll.u32 %s1457_s15, 4  ;;  %s1154_s16 = int_to_ptr.vmem [resolvable:$true] %s1153_s16 }
  0x35   :  { %v169_v13 = vsub.f32 %v96_v5, %v1517_v7  ;;  %1245 = vmatprep.mubr.f32.mxu1 %v1517_v7  ;;  %1236 = vmatprep.subr.mxu0 %v1514_v4  ;;  %v1536_v15 = vand.u32 4294901760, %v1523_v9  ;;  %v179_v16 = vsub.f32 %v99_v8, %v1525_v10  ;;  %v1540_v17 = vand.u32 4294901760, %v1529_v11  ;;  %s1398_s17 = scalar_lea.vmem %s1166_s14, 256  ;;  %p1403_p2 = scmp.lt.s32.totalorder %s1166_s14, %s1166_s14 }
  0x36   :  { %1237 = vmatpush3.msra.mxu0 %v1514_v4  ;;  %v702_v33 = vsub.f32 %v622_v23, %v1552_v30  ;;  %v693_v34 = vand.u32 4294901760, %v692_v32  ;;  %v75_v40 = vstv %s74_s2  ;;  %p1399_p1 = scmp.ne.s32.totalorder %s1166_s14, %s1398_s17  ;;  %p1404_p3 = scmp.lt.s32.totalorder %s1398_s17, %s1398_s17 }
  0x37   :  { %v170_v18 = vand.u32 4294901760, %v169_v13  ;;  %v220_v20 = vsub.f32 %v1523_v9, %v1536_v15  ;;  %v180_v21 = vand.u32 4294901760, %v179_v16  ;;  %v227_v22 = vsub.f32 %v1529_v11, %v1540_v17  ;;  %1248 = vmatprep.subr.mxu0 %v1523_v9 }
  0x38   :  { %v703_v35 = vand.u32 4294901760, %v702_v33  ;;  %v694_v36 = vsub.f32 %v692_v32, %v693_v34  ;;  %v83_v41 = vstv %s1184_s3  ;;  %v77_v42 = vmul.f32 %v75_v40, %v1506_v0  ;;  %p1405_p4 = por %p1404_p3, %p1403_p2 }
  0x39   :  { %v171_v24 = vsub.f32 %v169_v13, %v170_v18  ;;  %v221_v25 = vand.u32 4294901760, %v220_v20  ;;  %v181_v26 = vsub.f32 %v179_v16, %v180_v21  ;;  %v228_v27 = vand.u32 4294901760, %v227_v22 }
  0x3a   :  { %v704_v37 = vsub.f32 %v702_v33, %v703_v35  ;;  %v695_v38 = vand.u32 4294901760, %v694_v36  ;;  %v85_v43 = vmul.f32 %v83_v41, %v1506_v0  ;;  %v79_v44 = vstv %s78_s11  ;;  %p1406_p5 = pnand %p1405_p4, %p1399_p1 }
  0x3b   :  { %v172_v29 = vand.u32 4294901760, %v171_v24  ;;  %1241 = vmatprep.subr.mxu1 %v221_v25  ;;  %v182_v31 = vand.u32 4294901760, %v181_v26  ;;  %v87_v45 = vstv %s1185_s12  ;;  %v76_v46 = vmul.f32 %v75_v40, %v1508_v1 }
  0x3c   :  { %1242 = vmatpush3.msra.mxu1 %v221_v25  ;;  %v705_v39 = vand.u32 4294901760, %v704_v37  ;;  %v84_v47 = vmul.f32 %v83_v41, %v1508_v1  ;;  %v81_v48 = vadd.f32 %v79_v44, %v77_v42  ;;  %v89_v49 = vadd.f32 %v87_v45, %v85_v43 }
  0x3d   :  { %1238 = vmatprep.mubr.f32.mxu0 %v172_v29  ;;  %1243 = vmatprep.subr.mxu1 %v228_v27  ;;  %v80_v50 = vadd.f32 %v79_v44, %v76_v46 }
  0x3e   :  { %1239 = vmatmul.mubr.f32.vlgmr.msra.gmra.mxu0 %v182_v31  ;;  %1244 = vmatpush3.msra.mxu1 %v228_v27  ;;  %v88_v51 = vadd.f32 %v87_v45, %v84_v47  ;;  %v91_v52 = vmax.f32 %v81_v48, %v89_v49 }
  0x3f   :  { %1249 = vmatpush3.msra.mxu0 %v1523_v9  ;;  %1246 = vmatmul.mubr.f32.vlgmr.msra.gmra.mxu1 %v1525_v10 }
  0x40   :  { %1250 = vmatprep.subr.mxu0 %v1529_v11  ;;  %1255 = vmatprep.subr.mxu1 %v1511_v3  ;;  %v90_v53 = vmax.f32 %v80_v50, %v88_v51  ;;  %v604_v54 = vsub.f32 %v81_v48, %v91_v52  ;;  %v1127_v55 = vsub.f32 %v89_v49, %v91_v52 }
  0x41   :  { %1251 = vmatpush3.msra.mxu0 %v1529_v11  ;;  %1252 = vmatprep.mubr.f32.mxu0 %v169_v13 }
  0x42   :  { %1256 = vmatpush3.msra.mxu1 %v1511_v3  ;;  %1253 = vmatmul.mubr.f32.vlgmr.msra.gmra.mxu0 %v179_v16  ;;  %v603_v56 = vsub.f32 %v80_v50, %v90_v53  ;;  %v1126_v57 = vsub.f32 %v88_v51, %v90_v53  ;;  %v607_v58 = vmul.f32 1.442695, %v604_v54  ;;  %v1130_v59 = vmul.f32 1.442695, %v1127_v55 }
  0x43   :  { %1257 = vmatprep.subr.mxu1 %v1514_v4  ;;  %1262 = vmatprep.subr.mxu0 %v1536_v15 }
  0x44   :  { %1258 = vmatpush3.msra.mxu1 %v1514_v4  ;;  %1259 = vmatprep.mubr.f32.mxu1 %v170_v18  ;;  %v605_v60 = vmul.f32 1.442695, %v603_v56  ;;  %v1128_v62 = vmul.f32 1.442695, %v1126_v57  ;;  %1326 = vpow2.f32 %v607_v58 }
  0x45   :  { %1263 = vmatpush3.msra.mxu0 %v1536_v15  ;;  %1260 = vmatmul.mubr.f32.vlgmr.msra.gmra.mxu1 %v180_v21  ;;  %1328 = vpow2.f32 %v1130_v59 }
  0x46   :  { %1264 = vmatprep.subr.mxu0 %v1540_v17  ;;  %1269 = vmatprep.subr.mxu1 %v1511_v3  ;;  %1330 = vpow2.f32 %v605_v60 }
  0x47   :  { %1265 = vmatpush3.msra.mxu0 %v1540_v17  ;;  %1266 = vmatprep.mubr.f32.mxu0 %v1517_v7  ;;  %1332 = vpow2.f32 %v1128_v62 }
  0x48   :  { %1270 = vmatpush3.msra.mxu1 %v1511_v3  ;;  %1267 = vmatmul.mubr.f32.vlgmr.msra.gmra.mxu0 %v1525_v10 }
  0x49   :  { %1271 = vmatprep.subr.mxu1 %v1514_v4  ;;  %1276 = vmatprep.subr.mxu0 %v1511_v3 }
  0x4a   :  { %1272 = vmatpush3.msra.mxu1 %v1514_v4  ;;  %1273 = vmatprep.mubr.f32.mxu1 %v1517_v7 }
  0x4b   :  { %1277 = vmatpush3.msra.mxu0 %v1511_v3  ;;  %1274 = vmatmul.mubr.f32.vlgmr.msra.gmra.mxu1 %v1525_v10 }
  0x4c   :  { %1278 = vmatprep.subr.mxu0 %v1514_v4  ;;  %1283 = vmatprep.subr.mxu1 %v221_v25 }
  0x4d   :  { %1279 = vmatpush3.msra.mxu0 %v1514_v4  ;;  %1280 = vmatprep.mubr.f32.mxu0 %v695_v38 }
  0x4e   :  { %1284 = vmatpush3.msra.mxu1 %v221_v25  ;;  %1281 = vmatmul.mubr.f32.vlgmr.msra.gmra.mxu0 %v705_v39 }
  0x4f   :  { %1285 = vmatprep.subr.mxu1 %v228_v27  ;;  %1290 = vmatprep.subr.mxu0 %v1523_v9 }
  0x50   :  { %1286 = vmatpush3.msra.mxu1 %v228_v27  ;;  %1287 = vmatprep.mubr.f32.mxu1 %v1550_v28 }
  0x51   :  { %1291 = vmatpush3.msra.mxu0 %v1523_v9  ;;  %1288 = vmatmul.mubr.f32.vlgmr.msra.gmra.mxu1 %v1552_v30  ;;  %v1327_v10 = vpop.eup %1326 }
  0x52   :  { %1292 = vmatprep.subr.mxu0 %v1529_v11  ;;  %1297 = vmatprep.subr.mxu1 %v1511_v3  ;;  %v1329_v13 = vpop.eup %1328 }
  0x53   :  { %1293 = vmatpush3.msra.mxu0 %v1529_v11  ;;  %1294 = vmatprep.mubr.f32.mxu0 %v692_v32  ;;  %v1331_v14 = vpop.eup %1330  ;;  %v1133_v20 = vadd.f32 %v1329_v13, %v1327_v10 }
  0x54   :  { %1298 = vmatpush3.msra.mxu1 %v1511_v3  ;;  %1295 = vmatmul.mubr.f32.vlgmr.msra.gmra.mxu0 %v702_v33 }
  0x55   :  { %1299 = vmatprep.subr.mxu1 %v1514_v4  ;;  %1304 = vmatprep.subr.mxu0 %v1536_v15  ;;  %1334 = vrcp.f32 %v1133_v20 }
  0x56   :  { %1300 = vmatpush3.msra.mxu1 %v1514_v4  ;;  %1301 = vmatprep.mubr.f32.mxu1 %v693_v34 }
  0x57   :  { %1305 = vmatpush3.msra.mxu0 %v1536_v15  ;;  %1302 = vmatmul.mubr.f32.vlgmr.msra.gmra.mxu1 %v703_v35 }
  0x58   :  { %1306 = vmatprep.subr.mxu0 %v1540_v17  ;;  %1311 = vmatprep.subr.mxu1 %v1511_v3 }
  0x59   :  { %1307 = vmatpush3.msra.mxu0 %v1540_v17  ;;  %1308 = vmatprep.mubr.f32.mxu0 %v1550_v28  ;;  %v1333_v17 = vpop.eup %1332 }
  0x5a   :  { %1312 = vmatpush3.msra.mxu1 %v1511_v3  ;;  %1309 = vmatmul.mubr.f32.vlgmr.msra.gmra.mxu0 %v1552_v30  ;;  %v1132_v24 = vadd.f32 %v1333_v17, %v1331_v14 }
  0x5b   :  { %1313 = vmatprep.subr.mxu1 %v1514_v4  ;;  %1315 = vmatprep.mubr.f32.mxu1 %v1550_v28 }
  0x5c   :  { %1314 = vmatpush3.msra.mxu1 %v1514_v4  ;;  %1336 = vrcp.f32 %v1132_v24 }
  0x5d   :  { %1316 = vmatmul.mubr.f32.vlgmr.msra.gmra.mxu1 %v1552_v30 }
  0x62   :  { %v1335_v52 = vpop.eup %1334 }
  0x69   :  { %v1337_v56 = vpop.eup %1336 }
  0xfe   :  { %v1240_v61 = vpop.f32.mrf.mxu0 }
  0xff   :  { %v1247_v2 = vpop.f32.mrf.mxu1 }
 0x100   :  { %v174_v63 = vpop.f32.mrf.mxu0  ;;  %v272_v11 = vadd.f32 %v1247_v2, %v1240_v61 }
 0x101   :  { %v265_v3 = vpop.f32.mrf.mxu1 }
 0x102   :  { %v1254_v4 = vpop.f32.mrf.mxu0  ;;  %v266_v15 = vadd.f32 %v265_v3, %v174_v63 }
 0x103   :  { %v355_v19 = vadd.f32 %v1254_v4, %v272_v11 }
 0x104   :  { %v347_v5 = vpop.f32.mrf.mxu0 }
 0x105   :  { %v1261_v6 = vpop.f32.mrf.mxu1  ;;  %v348_v22 = vadd.f32 %v347_v5, %v266_v15 }
 0x106   :  { %v438_v26 = vadd.f32 %v1261_v6, %v355_v19 }
 0x107   :  { %v429_v7 = vpop.f32.mrf.mxu1 }
 0x108   :  { %v1268_v8 = vpop.f32.mrf.mxu0  ;;  %v430_v30 = vadd.f32 %v429_v7, %v348_v22 }
 0x109   :  { %v521_v33 = vadd.f32 %v1268_v8, %v438_v26 }
 0x10a   :  { %v514_v9 = vpop.f32.mrf.mxu0 }
 0x10b   :  { %v1275_v12 = vpop.f32.mrf.mxu1  ;;  %v515_v37 = vadd.f32 %v514_v9, %v430_v30 }
 0x10c   :  { %v600_v41 = vadd.f32 %v1275_v12, %v521_v33 }
 0x10d   :  { %v593_v16 = vpop.f32.mrf.mxu1 }
 0x10e   :  { %v1282_v18 = vpop.f32.mrf.mxu0  ;;  %v594_v45 = vadd.f32 %v593_v16, %v515_v37  ;;  %v612_v49 = vmul.f32 %v1327_v10, %v600_v41 }
 0x110   :  { %v697_v21 = vpop.f32.mrf.mxu0  ;;  %v611_v53 = vmul.f32 %v1331_v14, %v594_v45 }
 0x111   :  { %v1289_v23 = vpop.f32.mrf.mxu1 }
 0x112   :  { %v795_v25 = vadd.f32 %v1289_v23, %v1282_v18 }
 0x113   :  { %v788_v27 = vpop.f32.mrf.mxu1 }
 0x114   :  { %v789_v28 = vadd.f32 %v788_v27, %v697_v21  ;;  %v1296_v29 = vpop.f32.mrf.mxu0 }
 0x115   :  { %v878_v31 = vadd.f32 %v1296_v29, %v795_v25 }
 0x116   :  { %v870_v32 = vpop.f32.mrf.mxu0 }
 0x117   :  { %v871_v34 = vadd.f32 %v870_v32, %v789_v28  ;;  %v1303_v35 = vpop.f32.mrf.mxu1 }
 0x118   :  { %v961_v36 = vadd.f32 %v1303_v35, %v878_v31 }
 0x119   :  { %v952_v38 = vpop.f32.mrf.mxu1 }
 0x11a   :  { %v953_v39 = vadd.f32 %v952_v38, %v871_v34  ;;  %v1310_v40 = vpop.f32.mrf.mxu0 }
 0x11b   :  { %v1044_v42 = vadd.f32 %v1310_v40, %v961_v36 }
 0x11c   :  { %v1037_v43 = vpop.f32.mrf.mxu0 }
 0x11d   :  { %v1317_v44 = vpop.f32.mrf.mxu1  ;;  %v1038_v46 = vadd.f32 %v1037_v43, %v953_v39 }
 0x11e   :  { %v1123_v47 = vadd.f32 %v1317_v44, %v1044_v42 }
 0x11f   :  { %v1116_v48 = vpop.f32.mrf.mxu1 }
 0x120   :  { %v1135_v50 = vmul.f32 %v1329_v13, %v1123_v47  ;;  %v1117_v51 = vadd.f32 %v1116_v48, %v1038_v46 }
 0x122   :  { %v1137_v54 = vadd.f32 %v1135_v50, %v612_v49  ;;  %v1134_v55 = vmul.f32 %v1333_v17, %v1117_v51 }
 0x124   :  { %v1136_v57 = vadd.f32 %v1134_v55, %v611_v53  ;;  %v1141_v58 = vmul.f32 %v1335_v52, %v1137_v54 }
 0x126   :  { %v1139_v59 = vmul.f32 %v1337_v56, %v1136_v57  ;;  %v1145_v60 = vsub.f32 %v1506_v0, %v1141_v58  ;;  %1143 = vst [vmem:[#allocation12 + $0x8] sm:$0xff] %v1141_v58 }
 0x128   :  { %v1144_v61 = vsub.f32 %v1508_v1, %v1139_v59  ;;  %1147 = vst [vmem:[#allocation11 + $0x8] sm:$0xff] %v1145_v60  ;;  %1142 = vst [vmem:[#allocation12] sm:$0xff] %v1139_v59 }
 0x129   :  { %1409 = shalt.err (!%p1406_p5)
}
 0x12a   :  { %1171 = dma.vmem_to_hbm [thread:$0]  %s1166_s14, 256, %s1625_s5, [#allocation13], %s1453_s0, %s1453_s0, %s1454_s1   ;;  %1146 = vst [vmem:[#allocation11] sm:$0xff] %v1144_v61 }
 0x12b   :  { %s1418_s20 = scalar_lea.vmem %s1154_s16, 256  ;;  %p1423_p7 = scmp.lt.s32.totalorder %s1154_s16, %s1154_s16 }
 0x12c   :  { %p1419_p6 = scmp.ne.s32.totalorder %s1154_s16, %s1418_s20  ;;  %p1424_p8 = scmp.lt.s32.totalorder %s1418_s20, %s1418_s20 }
 0x12e   :  { %p1425_p9 = por %p1424_p8, %p1423_p7 }
 0x130   :  { %p1426_p10 = pnand %p1425_p9, %p1419_p6 }
 0x132   :  { %1429 = shalt.err (!%p1426_p10)
}
 0x133   :  { %1159 = dma.vmem_to_hbm [thread:$0]  %s1154_s16, 256, %s1624_s4, [#allocation4], %s1453_s0, %s1453_s0, %s1454_s1  }
 0x134   :  { %1446 = dma.done.wait [#allocation4], 256  }
 0x135   :  { %1447 = vsyncadd [#allocation4], 4294967040 }
 0x136   :  { %1448 = dma.done.wait [#allocation13], 256  }
 0x137   :  { %1449 = vsyncadd [#allocation13], 4294967040 }
 0x138   :  { %1178 = vsyncpa [#allocation3], 1 }
 0x139   :  { %1179 = vsyncpa [#allocation10], 1 }
 0x13a   :  { %1180 = vsyncpa [#allocation4], 1 }
 0x13b   :  { %1181 = vsyncpa [#allocation13], 1 }
 0x13c   :  { %1182 = vsyncpa [#allocation5], 1 }
 0x13d   :  { %1183 = vsyncpa [#allocation6], 1 }

</bundles_post_ra>
